<compile_context>
chip_gen: v6e
topology: v6e:2x2x1
jax: 0.10.0
libtpu: 0.0.40
codegen_flags: <defaults>
</compile_context>

<pallas_src>
import functools
import math

import jax
import jax.numpy as jnp
from jax.experimental import pallas as pl
from jax.experimental.pallas import tpu as pltpu

EMBEDDING_DIM = 32
HIDDEN_DIM = 4 * EMBEDDING_DIM  # 128
LANES = 128


def _round_up(x, m):
    return ((x + m - 1) // m) * m


def _gelu_exact(x):
    # nn.GELU() default: 0.5 * x * (1 + erf(x / sqrt(2)))
    return 0.5 * x * (1.0 + jax.lax.erf(x * (1.0 / math.sqrt(2.0))))


def mlp_kernel(x_ref, w1_ref, b1_ref, w2_ref, b2_ref, o_ref):
    # x_ref: lane-dense (tm//pack, pack*E) slab == tm logical rows of E feats.
    # Weights are block-diagonal packed, so no reshape/relayout is needed:
    #   h_lane = x_lane @ W1_bd + b1_tiled   -> (tm//pack, pack*H)
    #   y_lane = gelu(h_lane) @ W2_bd + b2_tiled -> (tm//pack, pack*E)
    x = x_ref[...]
    h = jnp.dot(x, w1_ref[...],
                preferred_element_type=jnp.float32) + b1_ref[...]
    g = _gelu_exact(h)
    y = jnp.dot(g, w2_ref[...],
                preferred_element_type=jnp.float32) + b2_ref[...]
    o_ref[...] = y.astype(o_ref.dtype)


@functools.partial(jax.jit, static_argnames=("tm",))
def mlp_forward(x, w1_t, b1, w2_t, b2, *, tm=4096):
    """x: (B, S, E) f32.  w1_t: (E, H), b1: (H,), w2_t: (H, E), b2: (E,)."""
    B, S, E = x.shape
    H = w1_t.shape[1]
    M = B * S

    # How many E-wide logical rows pack into one 128-lane line.
    pack = (LANES // E) if (E <= LANES and LANES % E == 0) else 1
    lane_w = pack * E          # 128 for E=32
    row_quantum = 8 * pack     # keeps the lane-dense tile's sublane dim % 8 == 0

    # Row tile: as large as requested (amortizes per-grid-step overhead), but
    # shrunk for small M so the parallel row axis still gets >= 2 steps when
    # there is enough work (v7x has 2 TensorCores sharing this axis).
    tm_eff = max(row_quantum,
                 min(_round_up(tm, row_quantum),
                     _round_up(pl.cdiv(M, 2), row_quantum)))
    M_pad = _round_up(M, tm_eff)        # pad only to the tile boundary
    grid_m = M_pad // tm_eff

    # Block-diagonal packed weights + tiled biases (kron with eye is exact).
    eye = jnp.eye(pack, dtype=w1_t.dtype)
    w1_bd = jnp.kron(eye, w1_t)                      # (pack*E, pack*H) = (128, 512)
    w2_bd = jnp.kron(eye, w2_t)                      # (pack*H, pack*E) = (512, 128)
    b1_bd = jnp.tile(b1, pack).reshape(1, pack * H)  # (1, 512)
    b2_bd = jnp.tile(b2, pack).reshape(1, pack * E)  # (1, 128)

    x2d = x.reshape(M, E)
    if M_pad != M:
        x2d = jnp.pad(x2d, ((0, M_pad - M), (0, 0)))
    x_lane = x2d.reshape(M_pad // pack, lane_w)      # free (contiguous) reshape

    out_lane = pl.pallas_call(
        mlp_kernel,
        out_shape=jax.ShapeDtypeStruct((M_pad // pack, lane_w), x.dtype),
        grid_spec=pltpu.PrefetchScalarGridSpec(
            num_scalar_prefetch=0,
            grid=(grid_m,),
            in_specs=[
                pl.BlockSpec((tm_eff // pack, lane_w), lambda i: (i, 0)),  # x slab
                pl.BlockSpec((lane_w, pack * H), lambda i: (0, 0)),  # W1 blockdiag
                pl.BlockSpec((1, pack * H), lambda i: (0, 0)),       # b1 tiled
                pl.BlockSpec((pack * H, lane_w), lambda i: (0, 0)),  # W2 blockdiag
                pl.BlockSpec((1, pack * E), lambda i: (0, 0)),       # b2 tiled
            ],
            out_specs=pl.BlockSpec((tm_eff // pack, lane_w), lambda i: (i, 0)),
        ),
        compiler_params=pltpu.CompilerParams(
            dimension_semantics=("parallel",)),
    )(x_lane, w1_bd, b1_bd, w2_bd, b2_bd)

    out2d = out_lane.reshape(M_pad, E)   # contiguous reshape; slice fuses into consumer
    if M_pad != M:
        out2d = out2d[:M]
    return out2d.reshape(B, S, E)


def init_params(key, e, h):
    # Deterministic synthetic parameters (PyTorch Linear shapes: W (out, in), b (out,))
    k1, k2, k3, k4 = jax.random.split(key, 4)
    w1 = jax.random.normal(k1, (h, e), jnp.float32) * (1.0 / math.sqrt(e))
    b1 = jax.random.normal(k2, (h,), jnp.float32) * 0.02
    w2 = jax.random.normal(k3, (e, h), jnp.float32) * (1.0 / math.sqrt(h))
    b2 = jax.random.normal(k4, (e,), jnp.float32) * 0.02
    return w1, b1, w2, b2


def reference(x, w1, b1, w2, b2):
    h = jnp.einsum("bse,he->bsh", x, w1) + b1
    g = _gelu_exact(h)
    return jnp.einsum("bsh,eh->bse", g, w2) + b2


if __name__ == "__main__":
    key = jax.random.PRNGKey(0)
    kx, kp = jax.random.split(key)

    B, S, E = 2, 8, EMBEDDING_DIM
    x = jax.random.normal(kx, (B, S, E), jnp.float32)
    w1, b1, w2, b2 = init_params(kp, E, HIDDEN_DIM)

    out = mlp_forward(x, w1.T, b1, w2.T, b2, tm=4096)
    out = jax.block_until_ready(out)

    ref = reference(x, w1, b1, w2, b2)
    assert out.shape == (B, S, E)
    assert jnp.allclose(out, ref, atol=1e-4, rtol=1e-4), "mismatch vs reference"

    print("KERNEL_OK")
</pallas_src>

<mosaic_0001>
module attributes {stable_mosaic.version = 11 : i64} {
  func.func @mlp_kernel(%arg0: i32, %arg1: memref<8x128xf32, #tpu.memory_space<vmem>>, %arg2: memref<128x512xf32, #tpu.memory_space<vmem>>, %arg3: memref<1x512xf32, #tpu.memory_space<vmem>>, %arg4: memref<512x128xf32, #tpu.memory_space<vmem>>, %arg5: memref<1x128xf32, #tpu.memory_space<vmem>>, %arg6: memref<8x128xf32, #tpu.memory_space<vmem>>) attributes {dimension_semantics = [#tpu.dimension_semantics<parallel>], iteration_bounds = array<i64: 1>, scalar_prefetch = 0 : i64, scratch_operands = 0 : i64, tpu.core_type = #tpu.core_type<tc>, window_params = [{transform_indices = @transform_0, window_bounds = array<i64: 8, 128>}, {pipeline_mode = #tpu.pipeline_mode<synchronous>, transform_indices = @transform_1, window_bounds = array<i64: 128, 512>}, {pipeline_mode = #tpu.pipeline_mode<synchronous>, transform_indices = @transform_2, window_bounds = array<i64: 1, 512>}, {pipeline_mode = #tpu.pipeline_mode<synchronous>, transform_indices = @transform_3, window_bounds = array<i64: 512, 128>}, {pipeline_mode = #tpu.pipeline_mode<synchronous>, transform_indices = @transform_4, window_bounds = array<i64: 1, 128>}, {transform_indices = @transform_5, window_bounds = array<i64: 8, 128>}]} {
    %c0 = arith.constant 0 : index
    %c0_0 = arith.constant 0 : index
    %0 = vector.load %arg1[%c0, %c0_0] : memref<8x128xf32, #tpu.memory_space<vmem>>, vector<8x128xf32>
    %c0_1 = arith.constant 0 : index
    %c0_2 = arith.constant 0 : index
    %1 = vector.load %arg2[%c0_1, %c0_2] : memref<128x512xf32, #tpu.memory_space<vmem>>, vector<128x512xf32>
    %cst = arith.constant dense<0.000000e+00> : vector<8x512xf32>
    %2 = tpu.matmul %0, %1, %cst {dimension_numbers = #tpu.dot_dimension_numbers<[1], [0], [0], [1], [0, 0, 1, 1], [], []>} : vector<8x128xf32>, vector<128x512xf32>, vector<8x512xf32> -> vector<8x512xf32>
    %c0_3 = arith.constant 0 : index
    %c0_4 = arith.constant 0 : index
    %3 = vector.load %arg3[%c0_3, %c0_4] : memref<1x512xf32, #tpu.memory_space<vmem>>, vector<1x512xf32>
    %4 = vector.broadcast %3 : vector<1x512xf32> to vector<8x512xf32>
    %5 = arith.addf %2, %4 : vector<8x512xf32>
    %cst_5 = arith.constant 5.000000e-01 : f32
    %6 = vector.broadcast %cst_5 : f32 to vector<8x512xf32>
    %7 = arith.mulf %6, %5 : vector<8x512xf32>
    %cst_6 = arith.constant 0.707106769 : f32
    %8 = vector.broadcast %cst_6 : f32 to vector<8x512xf32>
    %9 = arith.mulf %5, %8 : vector<8x512xf32>
    %10 = math.erf %9 : vector<8x512xf32>
    %cst_7 = arith.constant 1.000000e+00 : f32
    %11 = vector.broadcast %cst_7 : f32 to vector<8x512xf32>
    %12 = arith.addf %11, %10 : vector<8x512xf32>
    %13 = arith.mulf %7, %12 : vector<8x512xf32>
    %c0_8 = arith.constant 0 : index
    %c0_9 = arith.constant 0 : index
    %14 = vector.load %arg4[%c0_8, %c0_9] : memref<512x128xf32, #tpu.memory_space<vmem>>, vector<512x128xf32>
    %cst_10 = arith.constant dense<0.000000e+00> : vector<8x128xf32>
    %15 = tpu.matmul %13, %14, %cst_10 {dimension_numbers = #tpu.dot_dimension_numbers<[1], [0], [0], [1], [0, 0, 1, 1], [], []>} : vector<8x512xf32>, vector<512x128xf32>, vector<8x128xf32> -> vector<8x128xf32>
    %c0_11 = arith.constant 0 : index
    %c0_12 = arith.constant 0 : index
    %16 = vector.load %arg5[%c0_11, %c0_12] : memref<1x128xf32, #tpu.memory_space<vmem>>, vector<1x128xf32>
    %17 = vector.broadcast %16 : vector<1x128xf32> to vector<8x128xf32>
    %18 = arith.addf %15, %17 : vector<8x128xf32>
    %c0_13 = arith.constant 0 : index
    %c0_14 = arith.constant 0 : index
    %19 = vector.load %arg6[%c0_13, %c0_14] : memref<8x128xf32, #tpu.memory_space<vmem>>, vector<8x128xf32>
    tpu.vector_store %arg6[%c0_13, %c0_14], %18 {strides = array<i32>} : memref<8x128xf32, #tpu.memory_space<vmem>>, vector<8x128xf32>,
    return
  }
  func.func @transform_0(%arg0: i32) -> (i32, i32) {
    %c0_i32 = arith.constant 0 : i32
    %c0_i32_0 = arith.constant 0 : i32
    return %arg0, %c0_i32 : i32, i32
  }
  func.func @transform_1(%arg0: i32) -> (i32, i32) {
    %c0_i32 = arith.constant 0 : i32
    %c0_i32_0 = arith.constant 0 : i32
    %c0_i32_1 = arith.constant 0 : i32
    return %c0_i32, %c0_i32_0 : i32, i32
  }
  func.func @transform_2(%arg0: i32) -> (i32, i32) {
    %c0_i32 = arith.constant 0 : i32
    %c0_i32_0 = arith.constant 0 : i32
    %c0_i32_1 = arith.constant 0 : i32
    return %c0_i32, %c0_i32_0 : i32, i32
  }
  func.func @transform_3(%arg0: i32) -> (i32, i32) {
    %c0_i32 = arith.constant 0 : i32
    %c0_i32_0 = arith.constant 0 : i32
    %c0_i32_1 = arith.constant 0 : i32
    return %c0_i32, %c0_i32_0 : i32, i32
  }
  func.func @transform_4(%arg0: i32) -> (i32, i32) {
    %c0_i32 = arith.constant 0 : i32
    %c0_i32_0 = arith.constant 0 : i32
    %c0_i32_1 = arith.constant 0 : i32
    return %c0_i32, %c0_i32_0 : i32, i32
  }
  func.func @transform_5(%arg0: i32) -> (i32, i32) {
    %c0_i32 = arith.constant 0 : i32
    %c0_i32_0 = arith.constant 0 : i32
    return %arg0, %c0_i32 : i32, i32
  }
}

</mosaic_0001>

<bundles_post_ra>
// kernel: tile.19
= control target key start
LH: loop header
LB: loop body
LE: loop exit
PB: predicated region body
PF: predicated region fallthrough
CT: control target
= control target key end

     0   :  { %vm8_vm0 = vcmask 261120   ;;  %s40_s8 = smov 32   ;;  %s41_s9 = smov 64   ;;  %vm14_vm1 = vcmask 1048320   ;;  %vm20_vm2 = vcmask 785920   ;;  %vm26_vm3 = vcmask 523520   ;;  %s58_s0 = inlined_call_operand.vmem [shape: f32[4,32], index: 0, kind: input, shape index: {}]   ;;  %s59_s1 = inlined_call_operand.vmem [shape: f32[1,128], index: 1, kind: output, shape index: {}]  }
   0x1   :  { %v5_v0 = vld [vmem:[%s58_s0] sm:$0xf]  ;;  %s39_s0 = smov 96  }
   0x2   :  { %6 = vst [vmem:[#allocation1] sm:$0xf] %v5_v0 }
   0x9   :  { %v11_v1 = vld [vmem:[#allocation1 + $0x3] sm:$0x1]   ;;  %v23_v2 = vld [vmem:[#allocation1 + $0x1] sm:$0x1]   ;;  %v7_v3 = vld [vmem:[#allocation1] sm:$0x1]  }
   0xa   :  { %12 = vrot.lane.b32.xlu0 %v11_v1, %s39_s0  ;;  %24 = vrot.lane.b32.xlu1 %v23_v2, %s40_s8  ;;  %v17_v4 = vld [vmem:[#allocation1 + $0x2] sm:$0x1]   ;;  %9 = vst.msk [vmem:[#allocation0] sm:$0x1] %vm8_vm0, %v7_v3  }
   0xe   :  { %18 = vrot.lane.b32.xlu0 %v17_v4, %s41_s9 }
  0x7c   :  { %v13_v5 = vpop.permute.xlu0 %12   ;;  %v25_v6 = vpop.permute.xlu1 %24  }
  0x7d   :  { %15 = vst.msk [vmem:[#allocation0] sm:$0x1] %vm14_vm1, %v13_v5  }
  0x80   :  { %v19_v7 = vpop.permute.xlu0 %18  }
  0x81   :  { %21 = vst.msk [vmem:[#allocation0] sm:$0x1] %vm20_vm2, %v19_v7  }
  0x82   :  { %27 = vst.msk [vmem:[#allocation0] sm:$0x1] %vm26_vm3, %v25_v6  }
  0x89   :  { %v32_v8 = vld [vmem:[#allocation0] sm:$0x1] }
  0x8a   :  { %35 = vst [vmem:[%s59_s1] sm:$0x1] %v32_v8 }

// kernel: tile.18
= control target key start
LH: loop header
LB: loop body
LE: loop exit
PB: predicated region body
PF: predicated region fallthrough
CT: control target
= control target key end

     0   :  { %s22_s0 = inlined_call_operand.vmem [shape: f32[32], index: 0, kind: input, shape index: {}]   ;;  %s23_s1 = inlined_call_operand.vmem [shape: f32[4,32], index: 1, kind: output, shape index: {}]  }
   0x1   :  { %v4_v0 = vld [vmem:[%s22_s0] ss:$0 sm:$0xff] }
   0x2   :  { %5 = vst [vmem:[%s23_s1] sm:$0xf] %v4_v0 }

// kernel: tile.13
= control target key start
LH: loop header
LB: loop body
LE: loop exit
PB: predicated region body
PF: predicated region fallthrough
CT: control target
= control target key end

     0   :  { %s22_s0 = inlined_call_operand.vmem [shape: f32[128], index: 0, kind: input, shape index: {}]   ;;  %s23_s1 = inlined_call_operand.vmem [shape: f32[4,128], index: 1, kind: output, shape index: {}]  }
   0x1   :  { %v4_v0 = vld [vmem:[%s22_s0] ss:$0 sm:$0xff] }
   0x2   :  { %5 = vst [vmem:[%s23_s1] sm:$0xf] %v4_v0 }

// kernel: mlp_forward.1
= control target key start
LH: loop header
LB: loop body
LE: loop exit
PB: predicated region body
PF: predicated region fallthrough
CT: control target
= control target key end

     0   :  { %v565_v3 = vmov 0.0   ;;  %s992_s1 = inlined_call_operand.vmem [shape: f32[128,512], index: 1, kind: input, shape index: {}]   ;;  %s993_s0 = inlined_call_operand.vmem [shape: f32[8,128], index: 0, kind: input, shape index: {}]   ;;  %s994_s3 = inlined_call_operand.vmem [shape: f32[512,128], index: 3, kind: input, shape index: {}]   ;;  %s995_s2 = inlined_call_operand.vmem [shape: f32[1,512], index: 2, kind: input, shape index: {}]   ;;  %s996_s4 = inlined_call_operand.vmem [shape: f32[1,128], index: 4, kind: input, shape index: {}]   ;;  %s997_s5 = inlined_call_operand.vmem [shape: f32[8,128], index: 5, kind: output, shape index: {}]  }
   0x1   :  { %v82_v0 = vld [vmem:[%s992_s1 + $0x1e8] sm:$0xff]  ;;  %v84_v1 = vld [vmem:[%s992_s1 + $0x1f8] sm:$0xff]  ;;  %v81_v2 = vld [vmem:[%s992_s1 + $0x1e0] sm:$0xff]  ;;  %171 = vmatprep.mubr.f32.mxu0 %v565_v3  ;;  %242 = vmatprep.mubr.f32.mxu1 %v565_v3 }
   0x2   :  { %107 = vmatprep.subr.mxu0 %v82_v0  ;;  %178 = vmatprep.subr.mxu1 %v84_v1  ;;  %v83_v4 = vld [vmem:[%s992_s1 + $0x1f0] sm:$0xff]  ;;  %v78_v5 = vld [vmem:[%s992_s1 + $0x1c8] sm:$0xff]  ;;  %v80_v6 = vld [vmem:[%s992_s1 + $0x1d8] sm:$0xff] }
   0x3   :  { %108 = vmatpush1.msra.mxu0 %v81_v2  ;;  %179 = vmatpush1.msra.mxu1 %v83_v4  ;;  %v77_v7 = vld [vmem:[%s992_s1 + $0x1c0] sm:$0xff]  ;;  %v79_v8 = vld [vmem:[%s992_s1 + $0x1d0] sm:$0xff]  ;;  %v74_v9 = vld [vmem:[%s992_s1 + $0x1a8] sm:$0xff] }
   0x4   :  { %109 = vmatprep.subr.mxu0 %v78_v5  ;;  %180 = vmatprep.subr.mxu1 %v80_v6  ;;  %v76_v10 = vld [vmem:[%s992_s1 + $0x1b8] sm:$0xff]  ;;  %v73_v11 = vld [vmem:[%s992_s1 + $0x1a0] sm:$0xff]  ;;  %v75_v12 = vld [vmem:[%s992_s1 + $0x1b0] sm:$0xff] }
   0x5   :  { %110 = vmatpush1.msra.mxu0 %v77_v7  ;;  %181 = vmatpush1.msra.mxu1 %v79_v8  ;;  %v70_v13 = vld [vmem:[%s992_s1 + $0x188] sm:$0xff]  ;;  %v72_v14 = vld [vmem:[%s992_s1 + $0x198] sm:$0xff]  ;;  %v69_v15 = vld [vmem:[%s992_s1 + $0x180] sm:$0xff] }
   0x6   :  { %111 = vmatprep.subr.mxu0 %v74_v9  ;;  %182 = vmatprep.subr.mxu1 %v76_v10  ;;  %v71_v16 = vld [vmem:[%s992_s1 + $0x190] sm:$0xff]  ;;  %v66_v17 = vld [vmem:[%s992_s1 + $0x168] sm:$0xff]  ;;  %v68_v18 = vld [vmem:[%s992_s1 + $0x178] sm:$0xff] }
   0x7   :  { %112 = vmatpush1.msra.mxu0 %v73_v11  ;;  %183 = vmatpush1.msra.mxu1 %v75_v12  ;;  %v65_v19 = vld [vmem:[%s992_s1 + $0x160] sm:$0xff]  ;;  %v67_v20 = vld [vmem:[%s992_s1 + $0x170] sm:$0xff]  ;;  %v62_v21 = vld [vmem:[%s992_s1 + $0x148] sm:$0xff] }
   0x8   :  { %113 = vmatprep.subr.mxu0 %v70_v13  ;;  %184 = vmatprep.subr.mxu1 %v72_v14  ;;  %v64_v22 = vld [vmem:[%s992_s1 + $0x158] sm:$0xff]  ;;  %v61_v23 = vld [vmem:[%s992_s1 + $0x140] sm:$0xff]  ;;  %v63_v24 = vld [vmem:[%s992_s1 + $0x150] sm:$0xff] }
   0x9   :  { %114 = vmatpush1.msra.mxu0 %v69_v15  ;;  %185 = vmatpush1.msra.mxu1 %v71_v16  ;;  %v58_v25 = vld [vmem:[%s992_s1 + $0x128] sm:$0xff]  ;;  %v60_v26 = vld [vmem:[%s992_s1 + $0x138] sm:$0xff]  ;;  %v57_v27 = vld [vmem:[%s992_s1 + $0x120] sm:$0xff] }
   0xa   :  { %115 = vmatprep.subr.mxu0 %v66_v17  ;;  %186 = vmatprep.subr.mxu1 %v68_v18  ;;  %v59_v28 = vld [vmem:[%s992_s1 + $0x130] sm:$0xff]  ;;  %v54_v29 = vld [vmem:[%s992_s1 + $0x108] sm:$0xff]  ;;  %v56_v30 = vld [vmem:[%s992_s1 + $0x118] sm:$0xff] }
   0xb   :  { %116 = vmatpush1.msra.mxu0 %v65_v19  ;;  %187 = vmatpush1.msra.mxu1 %v67_v20  ;;  %v53_v31 = vld [vmem:[%s992_s1 + $0x100] sm:$0xff]  ;;  %v55_v32 = vld [vmem:[%s992_s1 + $0x110] sm:$0xff]  ;;  %v50_v33 = vld [vmem:[%s992_s1 + $0xe8] sm:$0xff] }
   0xc   :  { %117 = vmatprep.subr.mxu0 %v62_v21  ;;  %188 = vmatprep.subr.mxu1 %v64_v22  ;;  %v52_v34 = vld [vmem:[%s992_s1 + $0xf8] sm:$0xff]  ;;  %v49_v35 = vld [vmem:[%s992_s1 + $0xe0] sm:$0xff]  ;;  %v51_v36 = vld [vmem:[%s992_s1 + $0xf0] sm:$0xff] }
   0xd   :  { %118 = vmatpush1.msra.mxu0 %v61_v23  ;;  %189 = vmatpush1.msra.mxu1 %v63_v24  ;;  %v46_v37 = vld [vmem:[%s992_s1 + $0xc8] sm:$0xff]  ;;  %v48_v38 = vld [vmem:[%s992_s1 + $0xd8] sm:$0xff]  ;;  %v45_v39 = vld [vmem:[%s992_s1 + $0xc0] sm:$0xff] }
   0xe   :  { %119 = vmatprep.subr.mxu0 %v58_v25  ;;  %190 = vmatprep.subr.mxu1 %v60_v26  ;;  %v47_v40 = vld [vmem:[%s992_s1 + $0xd0] sm:$0xff]  ;;  %v42_v41 = vld [vmem:[%s992_s1 + $0xa8] sm:$0xff]  ;;  %v44_v42 = vld [vmem:[%s992_s1 + $0xb8] sm:$0xff] }
   0xf   :  { %120 = vmatpush1.msra.mxu0 %v57_v27  ;;  %191 = vmatpush1.msra.mxu1 %v59_v28  ;;  %v41_v43 = vld [vmem:[%s992_s1 + $0xa0] sm:$0xff]  ;;  %v43_v44 = vld [vmem:[%s992_s1 + $0xb0] sm:$0xff]  ;;  %v38_v45 = vld [vmem:[%s992_s1 + $0x88] sm:$0xff] }
  0x10   :  { %121 = vmatprep.subr.mxu0 %v54_v29  ;;  %192 = vmatprep.subr.mxu1 %v56_v30  ;;  %v40_v46 = vld [vmem:[%s992_s1 + $0x98] sm:$0xff]  ;;  %v37_v47 = vld [vmem:[%s992_s1 + $0x80] sm:$0xff]  ;;  %v39_v48 = vld [vmem:[%s992_s1 + $0x90] sm:$0xff] }
  0x11   :  { %122 = vmatpush1.msra.mxu0 %v53_v31  ;;  %193 = vmatpush1.msra.mxu1 %v55_v32  ;;  %v34_v49 = vld [vmem:[%s992_s1 + $0x68] sm:$0xff]  ;;  %v36_v50 = vld [vmem:[%s992_s1 + $0x78] sm:$0xff]  ;;  %v33_v51 = vld [vmem:[%s992_s1 + $0x60] sm:$0xff] }
  0x12   :  { %123 = vmatprep.subr.mxu0 %v50_v33  ;;  %194 = vmatprep.subr.mxu1 %v52_v34  ;;  %v35_v52 = vld [vmem:[%s992_s1 + $0x70] sm:$0xff]  ;;  %v30_v53 = vld [vmem:[%s992_s1 + $0x48] sm:$0xff]  ;;  %v32_v54 = vld [vmem:[%s992_s1 + $0x58] sm:$0xff] }
  0x13   :  { %124 = vmatpush1.msra.mxu0 %v49_v35  ;;  %195 = vmatpush1.msra.mxu1 %v51_v36  ;;  %v29_v55 = vld [vmem:[%s992_s1 + $0x40] sm:$0xff]  ;;  %v31_v56 = vld [vmem:[%s992_s1 + $0x50] sm:$0xff]  ;;  %v26_v57 = vld [vmem:[%s992_s1 + $0x28] sm:$0xff] }
  0x14   :  { %125 = vmatprep.subr.mxu0 %v46_v37  ;;  %196 = vmatprep.subr.mxu1 %v48_v38  ;;  %v28_v58 = vld [vmem:[%s992_s1 + $0x38] sm:$0xff]  ;;  %v25_v59 = vld [vmem:[%s992_s1 + $0x20] sm:$0xff]  ;;  %v27_v60 = vld [vmem:[%s992_s1 + $0x30] sm:$0xff] }
  0x15   :  { %126 = vmatpush1.msra.mxu0 %v45_v39  ;;  %197 = vmatpush1.msra.mxu1 %v47_v40  ;;  %v22_v61 = vld [vmem:[%s992_s1 + $0x8] sm:$0xff]  ;;  %v24_v62 = vld [vmem:[%s992_s1 + $0x18] sm:$0xff]  ;;  %v21_v63 = vld [vmem:[%s992_s1] sm:$0xff] }
  0x16   :  { %127 = vmatprep.subr.mxu0 %v42_v41  ;;  %198 = vmatprep.subr.mxu1 %v44_v42  ;;  %v23_v0 = vld [vmem:[%s992_s1 + $0x10] sm:$0xff]  ;;  %v20_v1 = vld [vmem:[%s993_s0] sm:$0xff]  ;;  %v300_v2 = vld [vmem:[%s994_s3 + $0xf8] sm:$0xff] }
  0x17   :  { %128 = vmatpush1.msra.mxu0 %v41_v43  ;;  %199 = vmatpush1.msra.mxu1 %v43_v44  ;;  %v332_v3 = vld [vmem:[%s994_s3 + $0x1f8] sm:$0xff]  ;;  %v299_v6 = vld [vmem:[%s994_s3 + $0xf0] sm:$0xff]  ;;  %v298_v10 = vld [vmem:[%s994_s3 + $0xe8] sm:$0xff] }
  0x18   :  { %129 = vmatprep.subr.mxu0 %v38_v45  ;;  %200 = vmatprep.subr.mxu1 %v40_v46  ;;  %v284_v4 = vld [vmem:[%s994_s3 + $0x78] sm:$0xff]  ;;  %v331_v7 = vld [vmem:[%s994_s3 + $0x1f0] sm:$0xff]  ;;  %v330_v11 = vld [vmem:[%s994_s3 + $0x1e8] sm:$0xff] }
  0x19   :  { %130 = vmatpush1.msra.mxu0 %v37_v47  ;;  %201 = vmatpush1.msra.mxu1 %v39_v48  ;;  %v316_v5 = vld [vmem:[%s994_s3 + $0x178] sm:$0xff]  ;;  %v283_v8 = vld [vmem:[%s994_s3 + $0x70] sm:$0xff]  ;;  %v282_v12 = vld [vmem:[%s994_s3 + $0x68] sm:$0xff] }
  0x1a   :  { %131 = vmatprep.subr.mxu0 %v34_v49  ;;  %202 = vmatprep.subr.mxu1 %v36_v50  ;;  %v315_v9 = vld [vmem:[%s994_s3 + $0x170] sm:$0xff]  ;;  %v314_v13 = vld [vmem:[%s994_s3 + $0x168] sm:$0xff]  ;;  %v297_v14 = vld [vmem:[%s994_s3 + $0xe0] sm:$0xff] }
  0x1b   :  { %132 = vmatpush1.msra.mxu0 %v33_v51  ;;  %203 = vmatpush1.msra.mxu1 %v35_v52  ;;  %v329_v15 = vld [vmem:[%s994_s3 + $0x1e0] sm:$0xff]  ;;  %v296_v18 = vld [vmem:[%s994_s3 + $0xd8] sm:$0xff]  ;;  %v295_v22 = vld [vmem:[%s994_s3 + $0xd0] sm:$0xff] }
  0x1c   :  { %133 = vmatprep.subr.mxu0 %v30_v53  ;;  %204 = vmatprep.subr.mxu1 %v32_v54  ;;  %v281_v16 = vld [vmem:[%s994_s3 + $0x60] sm:$0xff]  ;;  %v328_v19 = vld [vmem:[%s994_s3 + $0x1d8] sm:$0xff]  ;;  %v327_v23 = vld [vmem:[%s994_s3 + $0x1d0] sm:$0xff] }
  0x1d   :  { %134 = vmatpush1.msra.mxu0 %v29_v55  ;;  %205 = vmatpush1.msra.mxu1 %v31_v56  ;;  %v313_v17 = vld [vmem:[%s994_s3 + $0x160] sm:$0xff]  ;;  %v280_v20 = vld [vmem:[%s994_s3 + $0x58] sm:$0xff]  ;;  %v279_v24 = vld [vmem:[%s994_s3 + $0x50] sm:$0xff] }
  0x1e   :  { %135 = vmatprep.subr.mxu0 %v26_v57  ;;  %206 = vmatprep.subr.mxu1 %v28_v58  ;;  %v312_v21 = vld [vmem:[%s994_s3 + $0x158] sm:$0xff]  ;;  %v311_v25 = vld [vmem:[%s994_s3 + $0x150] sm:$0xff]  ;;  %v294_v26 = vld [vmem:[%s994_s3 + $0xc8] sm:$0xff] }
  0x1f   :  { %136 = vmatpush1.msra.mxu0 %v25_v59  ;;  %207 = vmatpush1.msra.mxu1 %v27_v60  ;;  %v326_v27 = vld [vmem:[%s994_s3 + $0x1c8] sm:$0xff]  ;;  %v293_v30 = vld [vmem:[%s994_s3 + $0xc0] sm:$0xff]  ;;  %v292_v34 = vld [vmem:[%s994_s3 + $0xb8] sm:$0xff] }
  0x20   :  { %137 = vmatprep.subr.mxu0 %v22_v61  ;;  %208 = vmatprep.subr.mxu1 %v24_v62  ;;  %v278_v28 = vld [vmem:[%s994_s3 + $0x48] sm:$0xff]  ;;  %v325_v31 = vld [vmem:[%s994_s3 + $0x1c0] sm:$0xff]  ;;  %v324_v35 = vld [vmem:[%s994_s3 + $0x1b8] sm:$0xff] }
  0x21   :  { %138 = vmatpush1.msra.mxu0 %v21_v63  ;;  %209 = vmatpush1.msra.mxu1 %v23_v0  ;;  %v310_v29 = vld [vmem:[%s994_s3 + $0x148] sm:$0xff]  ;;  %v277_v32 = vld [vmem:[%s994_s3 + $0x40] sm:$0xff]  ;;  %v276_v36 = vld [vmem:[%s994_s3 + $0x38] sm:$0xff] }
  0x22   :  { %172 = vmatmul.mubr.f32.vlgmr.msra.gmra.mxu0 %v20_v1  ;;  %243 = vmatmul.mubr.f32.vlgmr.msra.gmra.mxu1 %v20_v1  ;;  %v309_v33 = vld [vmem:[%s994_s3 + $0x140] sm:$0xff]  ;;  %v308_v37 = vld [vmem:[%s994_s3 + $0x138] sm:$0xff]  ;;  %v291_v38 = vld [vmem:[%s994_s3 + $0xb0] sm:$0xff] }
  0x23   :  { %486 = vmatprep.subr.mxu0 %v300_v2  ;;  %521 = vmatprep.subr.mxu1 %v332_v3  ;;  %v323_v39 = vld [vmem:[%s994_s3 + $0x1b0] sm:$0xff]  ;;  %v290_v42 = vld [vmem:[%s994_s3 + $0xa8] sm:$0xff]  ;;  %v289_v46 = vld [vmem:[%s994_s3 + $0xa0] sm:$0xff]  ;;  %v87_v2 = vlaneseq }
  0x24   :  { %487 = vmatpush3.msra.mxu0 %v284_v4  ;;  %522 = vmatpush3.msra.mxu1 %v316_v5  ;;  %v275_v40 = vld [vmem:[%s994_s3 + $0x30] sm:$0xff]  ;;  %v322_v43 = vld [vmem:[%s994_s3 + $0x1a8] sm:$0xff]  ;;  %v321_v47 = vld [vmem:[%s994_s3 + $0x1a0] sm:$0xff] }
  0x25   :  { %488 = vmatprep.subr.mxu0 %v299_v6  ;;  %523 = vmatprep.subr.mxu1 %v331_v7  ;;  %v307_v41 = vld [vmem:[%s994_s3 + $0x130] sm:$0xff]  ;;  %v274_v44 = vld [vmem:[%s994_s3 + $0x28] sm:$0xff]  ;;  %v273_v48 = vld [vmem:[%s994_s3 + $0x20] sm:$0xff]  ;;  %v88_v3 = vshrl.u32 %v87_v2, 7 }
  0x26   :  { %489 = vmatpush3.msra.mxu0 %v283_v8  ;;  %524 = vmatpush3.msra.mxu1 %v315_v9  ;;  %v306_v45 = vld [vmem:[%s994_s3 + $0x128] sm:$0xff]  ;;  %v305_v49 = vld [vmem:[%s994_s3 + $0x120] sm:$0xff]  ;;  %v288_v50 = vld [vmem:[%s994_s3 + $0x98] sm:$0xff] }
  0x27   :  { %490 = vmatprep.subr.mxu0 %v298_v10  ;;  %525 = vmatprep.subr.mxu1 %v330_v11  ;;  %v320_v51 = vld [vmem:[%s994_s3 + $0x198] sm:$0xff]  ;;  %v287_v54 = vld [vmem:[%s994_s3 + $0x90] sm:$0xff]  ;;  %v286_v58 = vld [vmem:[%s994_s3 + $0x88] sm:$0xff]  ;;  %v89_v4 = vsub.s32 0, %v88_v3  ;;  %v97_v5 = vsub.s32 2, %v88_v3  ;;  %v93_v7 = vsub.s32 1, %v88_v3 }
  0x28   :  { %491 = vmatpush3.msra.mxu0 %v282_v12  ;;  %526 = vmatpush3.msra.mxu1 %v314_v13  ;;  %v272_v52 = vld [vmem:[%s994_s3 + $0x18] sm:$0xff]  ;;  %v319_v55 = vld [vmem:[%s994_s3 + $0x190] sm:$0xff]  ;;  %v318_v59 = vld [vmem:[%s994_s3 + $0x188] sm:$0xff]  ;;  %v101_v8 = vsub.s32 3, %v88_v3 }
  0x29   :  { %492 = vmatprep.subr.mxu0 %v297_v14  ;;  %527 = vmatprep.subr.mxu1 %v329_v15  ;;  %v304_v53 = vld [vmem:[%s994_s3 + $0x118] sm:$0xff]  ;;  %v271_v56 = vld [vmem:[%s994_s3 + $0x10] sm:$0xff]  ;;  %v270_v60 = vld [vmem:[%s994_s3 + $0x8] sm:$0xff] }
  0x2a   :  { %493 = vmatpush3.msra.mxu0 %v281_v16  ;;  %528 = vmatpush3.msra.mxu1 %v313_v17  ;;  %v303_v57 = vld [vmem:[%s994_s3 + $0x110] sm:$0xff]  ;;  %v302_v61 = vld [vmem:[%s994_s3 + $0x108] sm:$0xff]  ;;  %v285_v62 = vld [vmem:[%s994_s3 + $0x80] sm:$0xff] }
  0x2b   :  { %494 = vmatprep.subr.mxu0 %v296_v18  ;;  %529 = vmatprep.subr.mxu1 %v328_v19  ;;  %v317_v63 = vld [vmem:[%s994_s3 + $0x180] sm:$0xff] }
  0x2c   :  { %495 = vmatpush3.msra.mxu0 %v280_v20  ;;  %530 = vmatpush3.msra.mxu1 %v312_v21  ;;  %v269_v0 = vld [vmem:[%s994_s3] sm:$0xff] }
  0x2d   :  { %496 = vmatprep.subr.mxu0 %v295_v22  ;;  %531 = vmatprep.subr.mxu1 %v327_v23  ;;  %v301_v1 = vld [vmem:[%s994_s3 + $0x100] sm:$0xff] }
  0x2e   :  { %497 = vmatpush3.msra.mxu0 %v279_v24  ;;  %532 = vmatpush3.msra.mxu1 %v311_v25  ;;  %v85_v6 = vld [vmem:[%s995_s2] sm:$0xf] }
  0x2f   :  { %498 = vmatprep.subr.mxu0 %v294_v26  ;;  %533 = vmatprep.subr.mxu1 %v326_v27  ;;  %v90_v9 = vrot.slane %v85_v6, %v89_v4  ;;  %v98_v10 = vrot.slane %v85_v6, %v97_v5  ;;  %v94_v13 = vrot.slane %v85_v6, %v93_v7 }
  0x30   :  { %499 = vmatpush3.msra.mxu0 %v278_v28  ;;  %534 = vmatpush3.msra.mxu1 %v310_v29  ;;  %v102_v14 = vrot.slane %v85_v6, %v101_v8 }
  0x31   :  { %500 = vmatprep.subr.mxu0 %v293_v30  ;;  %535 = vmatprep.subr.mxu1 %v325_v31 }
  0x32   :  { %501 = vmatpush3.msra.mxu0 %v277_v32  ;;  %536 = vmatpush3.msra.mxu1 %v309_v33 }
  0x33   :  { %502 = vmatprep.subr.mxu0 %v292_v34  ;;  %537 = vmatprep.subr.mxu1 %v324_v35 }
  0x34   :  { %503 = vmatpush3.msra.mxu0 %v276_v36  ;;  %538 = vmatpush3.msra.mxu1 %v308_v37 }
  0x35   :  { %504 = vmatprep.subr.mxu0 %v291_v38  ;;  %539 = vmatprep.subr.mxu1 %v323_v39 }
  0x36   :  { %505 = vmatpush3.msra.mxu0 %v275_v40  ;;  %540 = vmatpush3.msra.mxu1 %v307_v41 }
  0x37   :  { %506 = vmatprep.subr.mxu0 %v290_v42  ;;  %541 = vmatprep.subr.mxu1 %v322_v43  ;;  %v485_v43 = vld [vmem:[%s996_s4] ss:$0 sm:$0xff] }
  0x38   :  { %507 = vmatpush3.msra.mxu0 %v274_v44  ;;  %542 = vmatpush3.msra.mxu1 %v306_v45 }
  0x39   :  { %508 = vmatprep.subr.mxu0 %v289_v46  ;;  %543 = vmatprep.subr.mxu1 %v321_v47 }
  0x3a   :  { %509 = vmatpush3.msra.mxu0 %v273_v48  ;;  %544 = vmatpush3.msra.mxu1 %v305_v49 }
  0x3b   :  { %510 = vmatprep.subr.mxu0 %v288_v50  ;;  %545 = vmatprep.subr.mxu1 %v320_v51 }
  0x3c   :  { %511 = vmatpush3.msra.mxu0 %v272_v52  ;;  %546 = vmatpush3.msra.mxu1 %v304_v53 }
  0x3d   :  { %512 = vmatprep.subr.mxu0 %v287_v54  ;;  %547 = vmatprep.subr.mxu1 %v319_v55 }
  0x3e   :  { %513 = vmatpush3.msra.mxu0 %v271_v56  ;;  %548 = vmatpush3.msra.mxu1 %v303_v57 }
  0x3f   :  { %514 = vmatprep.subr.mxu0 %v286_v58  ;;  %549 = vmatprep.subr.mxu1 %v318_v59 }
  0x40   :  { %515 = vmatpush3.msra.mxu0 %v270_v60  ;;  %550 = vmatpush3.msra.mxu1 %v302_v61 }
  0x41   :  { %516 = vmatprep.subr.mxu0 %v285_v62  ;;  %551 = vmatprep.subr.mxu1 %v317_v63 }
  0x42   :  { %517 = vmatpush3.msra.mxu0 %v269_v0  ;;  %552 = vmatpush3.msra.mxu1 %v301_v1 }
  0xe2   :  { %v173_v11 = vpop.f32.mrf.mxu0  ;;  %v244_v12 = vpop.f32.mrf.mxu1 }
  0xe3   :  { %v174_v15 = vadd.f32 %v173_v11, %v90_v9  ;;  %v245_v16 = vadd.f32 %v244_v12, %v98_v10 }
  0xe4   :  { %v175_v17 = vpop.f32.mrf.mxu0  ;;  %v246_v18 = vpop.f32.mrf.mxu1 }
  0xe5   :  { %v253_v19 = vmul.f32 0.70710677, %v174_v15  ;;  %v255_v20 = vmul.f32 0.70710677, %v245_v16  ;;  %v176_v21 = vadd.f32 %v175_v17, %v94_v13  ;;  %v247_v22 = vadd.f32 %v246_v18, %v102_v14 }
  0xe6   :  { %v249_v33 = vmul.f32 0.5, %v174_v15  ;;  %v251_v36 = vmul.f32 0.5, %v245_v16 }
  0xe7   :  { %557 = verf.f32 %v253_v19  ;;  %v254_v23 = vmul.f32 0.70710677, %v176_v21  ;;  %v256_v24 = vmul.f32 0.70710677, %v247_v22  ;;  %v250_v31 = vmul.f32 0.5, %v176_v21 }
  0xe8   :  { %559 = verf.f32 %v255_v20  ;;  %v252_v34 = vmul.f32 0.5, %v247_v22 }
  0xe9   :  { %561 = verf.f32 %v254_v23 }
  0xea   :  { %563 = verf.f32 %v256_v24 }
  0xf4   :  { %v558_v25 = vpop.eup %557 }
  0xf5   :  { %v560_v26 = vpop.eup %559  ;;  %v261_v28 = vadd.f32 1.0, %v558_v25 }
  0xf6   :  { %v562_v27 = vpop.eup %561  ;;  %v263_v30 = vadd.f32 1.0, %v560_v26 }
  0xf7   :  { %v564_v29 = vpop.eup %563  ;;  %v262_v32 = vadd.f32 1.0, %v562_v27  ;;  %v265_v38 = vmul.f32 %v261_v28, %v249_v33 }
  0xf8   :  { %v264_v35 = vadd.f32 1.0, %v564_v29  ;;  %v267_v40 = vmul.f32 %v263_v30, %v251_v36 }
  0xf9   :  { %v266_v37 = vmul.f32 %v262_v32, %v250_v31 }
  0xfa   :  { %v268_v39 = vmul.f32 %v264_v35, %v252_v34 }
  0xfb   :  { %404 = vmatprep.mubr.f32.mxu0 %v266_v37 }
  0xfc   :  { %474 = vmatprep.mubr.f32.mxu1 %v268_v39  ;;  %405 = vmatmul.mubr.f32.vlgmr.msra.gmra.mxu0 %v265_v38 }
  0xfd   :  { %475 = vmatmul.mubr.f32.vlgmr.msra.gmra.mxu1 %v267_v40 }
 0x1bc   :  { %v518_v41 = vpop.f32.mrf.mxu0 }
 0x1bd   :  { %v553_v42 = vpop.f32.mrf.mxu1 }
 0x1be   :  { %v519_v44 = vpop.f32.mrf.mxu0 }
 0x1bf   :  { %v520_v45 = vadd.f32 %v519_v44, %v518_v41  ;;  %v554_v46 = vpop.f32.mrf.mxu1 }
 0x1c0   :  { %v555_v48 = vadd.f32 %v554_v46, %v553_v42 }
 0x1c1   :  { %v407_v47 = vadd.f32 %v520_v45, %v485_v43 }
 0x1c3   :  { %v477_v49 = vadd.f32 %v555_v48, %v407_v47 }
 0x1c5   :  { %480 = vst [vmem:[%s997_s5] sm:$0xff] %v477_v49 }

</bundles_post_ra>
